<compile_context>
chip_gen: v5e
topology: v5e:2x2
jax: 0.10.0
libtpu: 0.0.40
codegen_flags: <defaults>
</compile_context>

<pallas_src>
import numpy as np
import jax
import jax.numpy as jnp
from jax.experimental import pallas as pl
from jax.experimental.pallas import tpu as pltpu


def _state_critic_kernel(obs_ref, act_ref,
                         w1o_ref, w1a_ref, b1_ref,
                         w2_ref, b2_ref,
                         w3_ref, b3_ref,
                         o_ref):
    # ---- Linear 1 (concat folded into the GEMM) + ReLU ---------------------
    # [obs | act] @ W1 + b1  ==  obs @ W1[:Do] + act @ W1[Do:] + b1
    h = (jnp.dot(obs_ref[...], w1o_ref[...], preferred_element_type=jnp.float32)
         + jnp.dot(act_ref[...], w1a_ref[...], preferred_element_type=jnp.float32)
         + b1_ref[...])                                   # (TB, 2H) = [head1 | head2]
    h = jnp.maximum(h, 0.0)

    # ---- Linear 2 (block-diagonal over the two heads) + ReLU ---------------
    h = jnp.dot(h, w2_ref[...], preferred_element_type=jnp.float32) + b2_ref[...]
    h = jnp.maximum(h, 0.0)                               # (TB, 2H)

    # ---- Linear 3 (block-diagonal, one output column per head) -------------
    q = jnp.dot(h, w3_ref[...], preferred_element_type=jnp.float32) + b3_ref[...]
    o_ref[...] = q.astype(o_ref.dtype)                    # (TB, 2)


def state_critic_forward(obs, action, params):
    """Fused forward for both Q heads. Returns (q1, q2), each shape (B,)."""
    B, Do = obs.shape
    Da = action.shape[1]
    H = params["w1"].shape[-1]
    f32 = jnp.float32

    # ---- layout plumbing in the wrapper (cheap XLA ops, done once) ---------
    # Layer 1: stack both heads along the output axis -> (D, 2H), then split
    # the input axis so the concat is folded into two GEMMs.
    w1c = jnp.concatenate([params["w1"][0], params["w1"][1]], axis=-1)  # (D, 2H)
    w1o = w1c[:Do]                                                      # (Do, 2H)
    w1a = w1c[Do:]                                                      # (Da, 2H)
    b1 = jnp.concatenate([params["b1"][0], params["b1"][1]])[None, :]   # (1, 2H)

    # Layer 2: block-diagonal (2H, 2H) so the heads stay independent.
    zHH = jnp.zeros((H, H), f32)
    w2c = jnp.concatenate(
        [jnp.concatenate([params["w2"][0], zHH], axis=1),
         jnp.concatenate([zHH, params["w2"][1]], axis=1)], axis=0)      # (2H, 2H)
    b2 = jnp.concatenate([params["b2"][0], params["b2"][1]])[None, :]   # (1, 2H)

    # Layer 3: block-diagonal (2H, 2) -> column 0 = q1, column 1 = q2.
    zH1 = jnp.zeros((H, 1), f32)
    w3c = jnp.concatenate(
        [jnp.concatenate([params["w3"][0], zH1], axis=1),
         jnp.concatenate([zH1, params["w3"][1]], axis=1)], axis=0)      # (2H, 2)
    b3 = jnp.concatenate([params["b3"][0], params["b3"][1]])[None, :]   # (1, 2)

    # Batch tiling: full batch per block for small B; 128-row tiles otherwise.
    TB = B if B < 128 else 128
    grid = (pl.cdiv(B, TB),)

    out = pl.pallas_call(
        _state_critic_kernel,
        out_shape=jax.ShapeDtypeStruct((B, 2), jnp.float32),
        grid=grid,
        in_specs=[
            pl.BlockSpec((TB, Do), lambda b: (b, 0)),        # obs
            pl.BlockSpec((TB, Da), lambda b: (b, 0)),        # action
            pl.BlockSpec((Do, 2 * H), lambda b: (0, 0)),     # W1[:Do]  (both heads)
            pl.BlockSpec((Da, 2 * H), lambda b: (0, 0)),     # W1[Do:]  (both heads)
            pl.BlockSpec((1, 2 * H), lambda b: (0, 0)),      # b1
            pl.BlockSpec((2 * H, 2 * H), lambda b: (0, 0)),  # W2 block-diag
            pl.BlockSpec((1, 2 * H), lambda b: (0, 0)),      # b2
            pl.BlockSpec((2 * H, 2), lambda b: (0, 0)),      # W3 block-diag
            pl.BlockSpec((1, 2), lambda b: (0, 0)),          # b3
        ],
        out_specs=pl.BlockSpec((TB, 2), lambda b: (b, 0)),
        compiler_params=pltpu.CompilerParams(
            dimension_semantics=("parallel",)),
    )(obs, action, w1o, w1a, b1, w2c, b2, w3c, b3)

    return out[:, 0], out[:, 1]                              # squeeze(-1) per head


def _ref_forward(obs, action, params):
    """Pure-JAX reference (mirrors the PyTorch StateCritic forward)."""
    x = jnp.concatenate([obs, action], axis=-1)
    qs = []
    for i in range(2):
        h = jax.nn.relu(x @ params["w1"][i] + params["b1"][i])
        h = jax.nn.relu(h @ params["w2"][i] + params["b2"][i])
        q = h @ params["w3"][i] + params["b3"][i]
        qs.append(q[:, 0])
    return tuple(qs)


if __name__ == "__main__":
    key = jax.random.PRNGKey(0)
    B, Do, Da, H = 2, 24, 8, 32                   # batch, obs_dim, act_dim, hidden
    D = Do + Da
    ks = jax.random.split(key, 8)

    obs = jax.random.normal(ks[0], (B, Do), jnp.float32)
    action = jax.random.normal(ks[1], (B, Da), jnp.float32)

    # Stacked parameters for the two Q heads (index 0 = q1, index 1 = q2).
    # Weights stored as (in, out) so the kernel does x @ W directly.
    # (PyTorch uses orthogonal init at construction; any values are fine for
    #  verifying forward semantics, so we use scaled gaussians and small
    #  random biases to exercise the bias path.)
    def init(k, shape, fan_in):
        return jax.random.normal(k, shape, jnp.float32) / np.sqrt(fan_in)

    params = {
        "w1": init(ks[2], (2, D, H), D),
        "b1": 0.1 * jax.random.normal(ks[3], (2, H), jnp.float32),
        "w2": init(ks[4], (2, H, H), H),
        "b2": 0.1 * jax.random.normal(ks[5], (2, H), jnp.float32),
        "w3": init(ks[6], (2, H, 1), H),
        "b3": 0.1 * jax.random.normal(ks[7], (2, 1), jnp.float32),
    }

    q1, q2 = state_critic_forward(obs, action, params)
    q1 = jax.block_until_ready(q1)
    q2 = jax.block_until_ready(q2)

    r1, r2 = _ref_forward(obs, action, params)

    assert q1.shape == (B,) and q2.shape == (B,), (q1.shape, q2.shape)
    np.testing.assert_allclose(np.asarray(q1), np.asarray(r1), rtol=1e-3, atol=1e-3)
    np.testing.assert_allclose(np.asarray(q2), np.asarray(r2), rtol=1e-3, atol=1e-3)

    print("KERNEL_OK")
</pallas_src>

<mosaic_0001>
module attributes {stable_mosaic.version = 11 : i64} {
  func.func @_state_critic_kernel(%arg0: i32, %arg1: memref<2x24xf32, #tpu.memory_space<vmem>>, %arg2: memref<2x8xf32, #tpu.memory_space<vmem>>, %arg3: memref<24x64xf32, #tpu.memory_space<vmem>>, %arg4: memref<8x64xf32, #tpu.memory_space<vmem>>, %arg5: memref<1x64xf32, #tpu.memory_space<vmem>>, %arg6: memref<64x64xf32, #tpu.memory_space<vmem>>, %arg7: memref<1x64xf32, #tpu.memory_space<vmem>>, %arg8: memref<64x2xf32, #tpu.memory_space<vmem>>, %arg9: memref<1x2xf32, #tpu.memory_space<vmem>>, %arg10: memref<2x2xf32, #tpu.memory_space<vmem>>) attributes {dimension_semantics = [#tpu.dimension_semantics<parallel>], iteration_bounds = array<i64: 1>, scalar_prefetch = 0 : i64, scratch_operands = 0 : i64, tpu.core_type = #tpu.core_type<tc>, window_params = [{transform_indices = @transform_0, window_bounds = array<i64: 2, 24>}, {transform_indices = @transform_1, window_bounds = array<i64: 2, 8>}, {pipeline_mode = #tpu.pipeline_mode<synchronous>, transform_indices = @transform_2, window_bounds = array<i64: 24, 64>}, {pipeline_mode = #tpu.pipeline_mode<synchronous>, transform_indices = @transform_3, window_bounds = array<i64: 8, 64>}, {pipeline_mode = #tpu.pipeline_mode<synchronous>, transform_indices = @transform_4, window_bounds = array<i64: 1, 64>}, {pipeline_mode = #tpu.pipeline_mode<synchronous>, transform_indices = @transform_5, window_bounds = array<i64: 64, 64>}, {pipeline_mode = #tpu.pipeline_mode<synchronous>, transform_indices = @transform_6, window_bounds = array<i64: 1, 64>}, {pipeline_mode = #tpu.pipeline_mode<synchronous>, transform_indices = @transform_7, window_bounds = array<i64: 64, 2>}, {pipeline_mode = #tpu.pipeline_mode<synchronous>, transform_indices = @transform_8, window_bounds = array<i64: 1, 2>}, {transform_indices = @transform_9, window_bounds = array<i64: 2, 2>}]} {
    %c0 = arith.constant 0 : index
    %c0_0 = arith.constant 0 : index
    %0 = vector.load %arg1[%c0, %c0_0] : memref<2x24xf32, #tpu.memory_space<vmem>>, vector<2x24xf32>
    %c0_1 = arith.constant 0 : index
    %c0_2 = arith.constant 0 : index
    %1 = vector.load %arg3[%c0_1, %c0_2] : memref<24x64xf32, #tpu.memory_space<vmem>>, vector<24x64xf32>
    %cst = arith.constant dense<0.000000e+00> : vector<2x64xf32>
    %2 = tpu.matmul %0, %1, %cst {dimension_numbers = #tpu.dot_dimension_numbers<[1], [0], [0], [1], [0, 0, 1, 1], [], []>} : vector<2x24xf32>, vector<24x64xf32>, vector<2x64xf32> -> vector<2x64xf32>
    %c0_3 = arith.constant 0 : index
    %c0_4 = arith.constant 0 : index
    %3 = vector.load %arg2[%c0_3, %c0_4] : memref<2x8xf32, #tpu.memory_space<vmem>>, vector<2x8xf32>
    %c0_5 = arith.constant 0 : index
    %c0_6 = arith.constant 0 : index
    %4 = vector.load %arg4[%c0_5, %c0_6] : memref<8x64xf32, #tpu.memory_space<vmem>>, vector<8x64xf32>
    %cst_7 = arith.constant dense<0.000000e+00> : vector<2x64xf32>
    %5 = tpu.matmul %3, %4, %cst_7 {dimension_numbers = #tpu.dot_dimension_numbers<[1], [0], [0], [1], [0, 0, 1, 1], [], []>} : vector<2x8xf32>, vector<8x64xf32>, vector<2x64xf32> -> vector<2x64xf32>
    %6 = arith.addf %2, %5 : vector<2x64xf32>
    %c0_8 = arith.constant 0 : index
    %c0_9 = arith.constant 0 : index
    %7 = vector.load %arg5[%c0_8, %c0_9] : memref<1x64xf32, #tpu.memory_space<vmem>>, vector<1x64xf32>
    %8 = vector.broadcast %7 : vector<1x64xf32> to vector<2x64xf32>
    %9 = arith.addf %6, %8 : vector<2x64xf32>
    %cst_10 = arith.constant 0.000000e+00 : f32
    %10 = vector.broadcast %cst_10 : f32 to vector<2x64xf32>
    %11 = arith.maximumf %9, %10 : vector<2x64xf32>
    %c0_11 = arith.constant 0 : index
    %c0_12 = arith.constant 0 : index
    %12 = vector.load %arg6[%c0_11, %c0_12] : memref<64x64xf32, #tpu.memory_space<vmem>>, vector<64x64xf32>
    %cst_13 = arith.constant dense<0.000000e+00> : vector<2x64xf32>
    %13 = tpu.matmul %11, %12, %cst_13 {dimension_numbers = #tpu.dot_dimension_numbers<[1], [0], [0], [1], [0, 0, 1, 1], [], []>} : vector<2x64xf32>, vector<64x64xf32>, vector<2x64xf32> -> vector<2x64xf32>
    %c0_14 = arith.constant 0 : index
    %c0_15 = arith.constant 0 : index
    %14 = vector.load %arg7[%c0_14, %c0_15] : memref<1x64xf32, #tpu.memory_space<vmem>>, vector<1x64xf32>
    %15 = vector.broadcast %14 : vector<1x64xf32> to vector<2x64xf32>
    %16 = arith.addf %13, %15 : vector<2x64xf32>
    %cst_16 = arith.constant 0.000000e+00 : f32
    %17 = vector.broadcast %cst_16 : f32 to vector<2x64xf32>
    %18 = arith.maximumf %16, %17 : vector<2x64xf32>
    %c0_17 = arith.constant 0 : index
    %c0_18 = arith.constant 0 : index
    %19 = vector.load %arg8[%c0_17, %c0_18] : memref<64x2xf32, #tpu.memory_space<vmem>>, vector<64x2xf32>
    %cst_19 = arith.constant dense<0.000000e+00> : vector<2x2xf32>
    %20 = tpu.matmul %18, %19, %cst_19 {dimension_numbers = #tpu.dot_dimension_numbers<[1], [0], [0], [1], [0, 0, 1, 1], [], []>} : vector<2x64xf32>, vector<64x2xf32>, vector<2x2xf32> -> vector<2x2xf32>
    %c0_20 = arith.constant 0 : index
    %c0_21 = arith.constant 0 : index
    %21 = vector.load %arg9[%c0_20, %c0_21] : memref<1x2xf32, #tpu.memory_space<vmem>>, vector<1x2xf32>
    %22 = vector.broadcast %21 : vector<1x2xf32> to vector<2x2xf32>
    %23 = arith.addf %20, %22 : vector<2x2xf32>
    %c0_22 = arith.constant 0 : index
    %c0_23 = arith.constant 0 : index
    %24 = vector.load %arg10[%c0_22, %c0_23] : memref<2x2xf32, #tpu.memory_space<vmem>>, vector<2x2xf32>
    tpu.vector_store %arg10[%c0_22, %c0_23], %23 {strides = array<i32>} : memref<2x2xf32, #tpu.memory_space<vmem>>, vector<2x2xf32>,
    return
  }
  func.func @transform_0(%arg0: i32) -> (i32, i32) {
    %c0_i32 = arith.constant 0 : i32
    %c0_i32_0 = arith.constant 0 : i32
    return %arg0, %c0_i32 : i32, i32
  }
  func.func @transform_1(%arg0: i32) -> (i32, i32) {
    %c0_i32 = arith.constant 0 : i32
    %c0_i32_0 = arith.constant 0 : i32
    return %arg0, %c0_i32 : i32, i32
  }
  func.func @transform_2(%arg0: i32) -> (i32, i32) {
    %c0_i32 = arith.constant 0 : i32
    %c0_i32_0 = arith.constant 0 : i32
    %c0_i32_1 = arith.constant 0 : i32
    return %c0_i32, %c0_i32_0 : i32, i32
  }
  func.func @transform_3(%arg0: i32) -> (i32, i32) {
    %c0_i32 = arith.constant 0 : i32
    %c0_i32_0 = arith.constant 0 : i32
    %c0_i32_1 = arith.constant 0 : i32
    return %c0_i32, %c0_i32_0 : i32, i32
  }
  func.func @transform_4(%arg0: i32) -> (i32, i32) {
    %c0_i32 = arith.constant 0 : i32
    %c0_i32_0 = arith.constant 0 : i32
    %c0_i32_1 = arith.constant 0 : i32
    return %c0_i32, %c0_i32_0 : i32, i32
  }
  func.func @transform_5(%arg0: i32) -> (i32, i32) {
    %c0_i32 = arith.constant 0 : i32
    %c0_i32_0 = arith.constant 0 : i32
    %c0_i32_1 = arith.constant 0 : i32
    return %c0_i32, %c0_i32_0 : i32, i32
  }
  func.func @transform_6(%arg0: i32) -> (i32, i32) {
    %c0_i32 = arith.constant 0 : i32
    %c0_i32_0 = arith.constant 0 : i32
    %c0_i32_1 = arith.constant 0 : i32
    return %c0_i32, %c0_i32_0 : i32, i32
  }
  func.func @transform_7(%arg0: i32) -> (i32, i32) {
    %c0_i32 = arith.constant 0 : i32
    %c0_i32_0 = arith.constant 0 : i32
    %c0_i32_1 = arith.constant 0 : i32
    return %c0_i32, %c0_i32_0 : i32, i32
  }
  func.func @transform_8(%arg0: i32) -> (i32, i32) {
    %c0_i32 = arith.constant 0 : i32
    %c0_i32_0 = arith.constant 0 : i32
    %c0_i32_1 = arith.constant 0 : i32
    return %c0_i32, %c0_i32_0 : i32, i32
  }
  func.func @transform_9(%arg0: i32) -> (i32, i32) {
    %c0_i32 = arith.constant 0 : i32
    %c0_i32_0 = arith.constant 0 : i32
    return %arg0, %c0_i32 : i32, i32
  }
}

</mosaic_0001>

<bundles_post_ra>
// kernel: tpu_custom_call.1
= control target key start
LH: loop header
LB: loop body
LE: loop exit
PB: predicated region body
PF: predicated region fallthrough
CT: control target
= control target key end

     0   :  { %14 = vsyncpa [#allocation3], 0  ;;  %s471_s0 = inlined_call_operand.vmem [shape: f32[2,24], index: 0, kind: input, shape index: {}]   ;;  %s472_s1 = inlined_call_operand.hbm [shape: f32[2,8], index: 1, kind: input, shape index: {}]   ;;  %s473_s2 = inlined_call_operand.hbm [shape: f32[24,64], index: 2, kind: input, shape index: {}]   ;;  %s474_s3 = inlined_call_operand.hbm [shape: f32[8,64], index: 3, kind: input, shape index: {}]   ;;  %s475_s4 = inlined_call_operand.vmem [shape: f32[1,64], index: 4, kind: input, shape index: {}]   ;;  %s476_s5 = inlined_call_operand.vmem [shape: f32[64,64], index: 5, kind: input, shape index: {}]   ;;  %s477_s6 = inlined_call_operand.vmem [shape: f32[1,64], index: 6, kind: input, shape index: {}]   ;;  %s478_s7 = inlined_call_operand.vmem [shape: f32[64,2], index: 7, kind: input, shape index: {}]   ;;  %s479_s8 = inlined_call_operand.vmem [shape: f32[1,2], index: 8, kind: input, shape index: {}]   ;;  %s480_s9 = inlined_call_operand.hbm [shape: f32[2,2], index: 9, kind: output, shape index: {}]  }
   0x1   :  { %15 = vsyncpa [#allocation6], 0  ;;  %s34_s11 = sshll.u32 %s473_s2, 4  ;;  %s35_s11 = int_to_ptr.hbm [resolvable:$true] %s34_s11 }
   0x2   :  { %16 = vsyncpa [#allocation4], 0  ;;  %s343_s12 = smov [#allocation5]   ;;  %s24_s16 = sshll.u32 %s472_s1, 4  ;;  %s25_s16 = int_to_ptr.hbm [resolvable:$true] %s24_s16 }
   0x3   :  { %s36_s13 = sshll.u32 %s343_s12, 4  ;;  %s344_s17 = smov 128   ;;  %s37_s13 = int_to_ptr.vmem [resolvable:$true] %s36_s13 }
   0x4   :  { %s345_s18 = smov 8   ;;  %s346_s19 = smov [#allocation2]  }
   0x5   :  { %42 = dma.hbm_to_vmem [thread:$0]  %s35_s11, 384, %s37_s13, [#allocation6], %s344_s17, %s344_s17, %s345_s18  }
   0x6   :  { %s26_s20 = sshll.u32 %s346_s19, 4  ;;  %s48_s23 = sshll.u32 %s474_s3, 4  ;;  %s27_s20 = int_to_ptr.vmem [resolvable:$true] %s26_s20  ;;  %s49_s23 = int_to_ptr.hbm [resolvable:$true] %s48_s23 }
   0x7   :  { %29 = dma.hbm_to_vmem [thread:$0]  %s25_s16, 32, %s27_s20, [#allocation3]  }
   0x8   :  { %s347_s2 = smov [#allocation7]  }
   0x9   :  { %s50_s24 = sshll.u32 %s347_s2, 4  ;;  %s51_s24 = int_to_ptr.vmem [resolvable:$true] %s50_s24 }
   0xa   :  { %53 = dma.hbm_to_vmem [thread:$0]  %s49_s23, 128, %s51_s24, [#allocation6]  }
   0xb   :  { %337 = dma.done.wait [#allocation3], 32  }
   0xc   :  { %338 = vsyncadd [#allocation3], 4294967264 }
   0xd   :  { %339 = dma.done.wait [#allocation6], 512  }
   0xe   :  { %340 = vsyncadd [#allocation6], 4294966784  ;;  %vm82_vm0 = vcmask 64512   ;;  %v79_v0 = vld [vmem:[#allocation5 + $0x10] sm:$0xff]  ;;  %v78_v1 = vld [vmem:[#allocation5 + $0x8] sm:$0xff]  ;;  %vm106_vm1 = vcmask 195584  }
   0xf   :  { %v81_v2 = vld [vmem:[#allocation7] sm:$0xff]  ;;  %123 = vmatpush.msra.mxu1 %v79_v0  ;;  %v77_v4 = vld [vmem:[#allocation5] sm:$0xff]  ;;  %v142_v6 = vld [vmem:[%s476_s5 + $0x30] sm:$0xff]  ;;  %vm148_vm2 = vcmask 523264   ;;  %s348_s14 = smov [#allocation8]   ;;  %s217_s18 = sshll.u32 %s480_s9, 4  ;;  %s218_s18 = int_to_ptr.hbm [resolvable:$true] %s217_s18 }
  0x10   :  { %101 = vmatpush.msra.mxu0 %v81_v2  ;;  %v80_v3 = vld [vmem:[#allocation2] sm:$0x3]  ;;  %v143_v5 = vld [vmem:[%s476_s5 + $0x38] sm:$0xff]  ;;  %v141_v8 = vld [vmem:[%s476_s5 + $0x28] sm:$0xff]  ;;  %s215_s15 = sshll.u32 %s348_s14, 4  ;;  %vm208_vm3 = vcmask 9216   ;;  %s216_s15 = int_to_ptr.vmem [resolvable:$true] %s215_s15 }
  0x11   :  { %228 = vmatmul.msk.f32.vlgmr.msra.gmra.mxu0 %vm82_vm0, %v80_v3  ;;  %124 = vmatpush.msra.mxu1 %v78_v1  ;;  %v76_v7 = vld [vmem:[%s471_s0] sm:$0x3]  ;;  %v139_v10 = vld [vmem:[%s476_s5 + $0x18] sm:$0xff]  ;;  %v138_v11 = vld [vmem:[%s476_s5 + $0x10] sm:$0xff] }
  0x12   :  { %160 = vmatpush.msra.mxu2 %v143_v5  ;;  %v140_v9 = vld [vmem:[%s476_s5 + $0x20] sm:$0xff]  ;;  %v137_v12 = vld [vmem:[%s476_s5 + $0x8] sm:$0xff]  ;;  %v180_v14 = vld [vmem:[%s478_s7 + $0x38] sm:$0xff] }
  0x13   :  { %125 = vmatpush.msra.mxu1 %v77_v4  ;;  %v136_v13 = vld [vmem:[%s476_s5] sm:$0xff]  ;;  %v179_v15 = vld [vmem:[%s478_s7 + $0x30] sm:$0xff]  ;;  %196 = vmatpush.msra.mxu3 %v180_v14  ;;  %v178_v16 = vld [vmem:[%s478_s7 + $0x28] sm:$0xff] }
  0x14   :  { %161 = vmatpush.msra.mxu2 %v142_v6  ;;  %229 = vmatmul.msk.f32.vlgmr.msra.gmra.mxu1 %vm106_vm1, %v76_v7  ;;  %v177_v17 = vld [vmem:[%s478_s7 + $0x20] sm:$0xff]  ;;  %v176_v18 = vld [vmem:[%s478_s7 + $0x18] sm:$0xff]  ;;  %v175_v25 = vld [vmem:[%s478_s7 + $0x10] sm:$0xff] }
  0x15   :  { %197 = vmatpush.msra.mxu3 %v179_v15  ;;  %v238_v20 = vld [vmem:[%s475_s4] ss:$0 sm:$0xff]  ;;  %v174_v26 = vld [vmem:[%s478_s7 + $0x8] sm:$0xff] }
  0x16   :  { %162 = vmatpush.msra.mxu2 %v141_v8  ;;  %v173_v27 = vld [vmem:[%s478_s7] sm:$0xff] }
  0x17   :  { %198 = vmatpush.msra.mxu3 %v178_v16  ;;  %v239_v28 = vld [vmem:[%s477_s6] ss:$0 sm:$0xff] }
  0x18   :  { %163 = vmatpush.msra.mxu2 %v140_v9  ;;  %v240_v32 = vld [vmem:[%s479_s8] ss:$0 sm:$0xff] }
  0x19   :  { %199 = vmatpush.msra.mxu3 %v177_v17 }
  0x1a   :  { %164 = vmatpush.msra.mxu2 %v139_v10 }
  0x1b   :  { %200 = vmatpush.msra.mxu3 %v176_v18 }
  0x1c   :  { %165 = vmatpush.msra.mxu2 %v138_v11 }
  0x1d   :  { %201 = vmatpush.msra.mxu3 %v175_v25 }
  0x1e   :  { %166 = vmatpush.msra.mxu2 %v137_v12 }
  0x1f   :  { %202 = vmatpush.msra.mxu3 %v174_v26 }
  0x20   :  { %167 = vmatpush.msra.mxu2 %v136_v13 }
  0x21   :  { %203 = vmatpush.msra.mxu3 %v173_v27 }
  0x8e   :  { %v103_v19 = vpop.f32.mrf.mxu0 }
  0x91   :  { %v127_v21 = vpop.f32.mrf.mxu1 }
  0x92   :  { %v128_v22 = vadd.f32 %v127_v21, %v103_v19 }
  0x94   :  { %v134_v23 = vadd.f32 %v238_v20, %v128_v22 }
  0x96   :  { %v135_v24 = vmax.f32 %v134_v23, 0.0 }
  0x98   :  { %230 = vmatmul.msk.f32.vlgmr.msra.gmra.mxu2 %vm148_vm2, %v135_v24 }
 0x11b   :  { %v169_v29 = vpop.f32.mrf.mxu2 }
 0x11c   :  { %v170_v30 = vadd.f32 %v239_v28, %v169_v29 }
 0x11e   :  { %v172_v31 = vmax.f32 %v170_v30, 0.0 }
 0x120   :  { %231 = vmatmul.msk.f32.vlgmr.msra.gmra.mxu3 %vm148_vm2, %v172_v31 }
 0x1a3   :  { %v205_v33 = vpop.f32.mrf.mxu3 }
 0x1a4   :  { %v206_v34 = vadd.f32 %v240_v32, %v205_v33 }
 0x1a6   :  { %209 = vst.msk [vmem:[#allocation8] sm:$0x3] %vm208_vm3, %v206_v34 }
 0x1a7   :  { %220 = dma.vmem_to_hbm [thread:$0]  %s216_s15, 32, %s218_s18, [#allocation4]  }
 0x1a8   :  { %341 = dma.done.wait [#allocation4], 32  }
 0x1a9   :  { %342 = vsyncadd [#allocation4], 4294967264 }
 0x1aa   :  { %225 = vsyncpa [#allocation3], 1 }
 0x1ab   :  { %226 = vsyncpa [#allocation6], 1 }
 0x1ac   :  { %227 = vsyncpa [#allocation4], 1 }

</bundles_post_ra>
